<compile_context>
chip_gen: v7x
topology: tpu7x:2x2x1
jax: 0.10.0
libtpu: 0.0.40
codegen_flags: <defaults>
</compile_context>

<pallas_src>
import jax
import jax.numpy as jnp
from jax.experimental import pallas as pl
from jax.experimental.pallas import tpu as pltpu


# ---------------------------------------------------------------------------
# Kernel: pointwise-conv stem + ReLU + global sum pool (one pathway)
# grid = (N, num_spatial_tiles); axis 1 is the reduction (accumulator) axis.
# ---------------------------------------------------------------------------
def _make_stem_pool_kernel(s_total, tile_s):
    needs_mask = (s_total % tile_s) != 0     # static: tail block only exists if S % tile != 0

    def kernel(x_ref, w_ref, b_ref, o_ref):
        si = pl.program_id(1)

        @pl.when(si == 0)
        def _init():
            o_ref[...] = jnp.zeros_like(o_ref)

        x = x_ref[0]                                        # (C_in, tile_s) f32, S on lanes
        # Pointwise conv: (C_out, C_in) @ (C_in, tile_s) -> (C_out, tile_s); K=3 so the
        # matmul is trivial — the kernel is memory/VPU bound, not MXU bound.
        y = jnp.dot(w_ref[...], x, preferred_element_type=jnp.float32)
        y = jnp.maximum(y + b_ref[...], 0.0)                # bias (C_out,1) lane-broadcast + ReLU

        if needs_mask:                                      # mask the OOB tail of the last block
            lane = jax.lax.broadcasted_iota(jnp.int32, y.shape, 1)
            y = jnp.where(si * tile_s + lane < s_total, y, 0.0)

        # Global average pool: accumulate raw sums; 1/S normalization is applied in XLA.
        o_ref[0] += jnp.sum(y, axis=1, keepdims=True)       # (C_out, 1)

    return kernel


# ---------------------------------------------------------------------------
# One pathway: stem + ReLU + global average pool
# ---------------------------------------------------------------------------
def _stem_and_pool(x, w, b, *, max_tile=32 * 1024):
    """x: (N, C_in, T, H, W) f32.  w: (C_in, C_out).  b: (1, C_out).  Returns (N, C_out)."""
    n, c_in, t, h, wd = x.shape
    s_total = t * h * wd
    xs = x.reshape(n, c_in, s_total)          # NCTHW -> (N, C_in, S): free, no layout copy

    c_out = w.shape[1]
    w_t = jnp.transpose(w)                    # (C_out, C_in) — tiny
    b_c = jnp.reshape(b, (c_out, 1))          # (C_out, 1)

    # Spatial (lane-axis) tile: whole S when small (full-dim block is always legal),
    # else a large multiple of 128; the in-kernel mask handles a partial last block.
    tile_s = s_total if s_total <= max_tile else max_tile
    num_tiles = pl.cdiv(s_total, tile_s)

    pooled_sums = pl.pallas_call(
        _make_stem_pool_kernel(s_total, tile_s),
        out_shape=jax.ShapeDtypeStruct((n, c_out, 1), jnp.float32),
        grid_spec=pltpu.PrefetchScalarGridSpec(
            num_scalar_prefetch=0,
            grid=(n, num_tiles),                         # reduction axis (si) innermost
            in_specs=[
                pl.BlockSpec((1, c_in, tile_s), lambda ni, si: (ni, 0, si)),
                pl.BlockSpec((c_out, c_in), lambda ni, si: (0, 0)),
                pl.BlockSpec((c_out, 1), lambda ni, si: (0, 0)),
            ],
            out_specs=pl.BlockSpec((1, c_out, 1), lambda ni, si: (ni, 0, 0)),
        ),
        # TODO(synk): with batch N < 2 on v7x one TensorCore idles; if that matters, split the
        #             si reduction into a leading size-2 "parallel" axis with partial sums.
        compiler_params=pltpu.CompilerParams(
            dimension_semantics=("parallel", "arbitrary")),
    )(xs, w_t, b_c)

    return pooled_sums[:, :, 0] * jnp.float32(1.0 / s_total)   # mean over (T, H, W)


# ---------------------------------------------------------------------------
# Full mySlowfast forward
# ---------------------------------------------------------------------------
def my_slowfast_forward(x_slow, x_fast, params, *, max_tile=32 * 1024):
    """
    x_slow: (N, 3, T_slow, H, W)  x_fast: (N, 3, T_fast, H, W)   (PyTorch NCTHW)
    returns: (N, num_classes) float32
    """
    pooled_slow = _stem_and_pool(x_slow, params["w_slow"], params["b_slow"], max_tile=max_tile)
    pooled_fast = _stem_and_pool(x_fast, params["w_fast"], params["b_fast"], max_tile=max_tile)

    # poolcon channel concat + reshead: dropout (eval = identity) -> Linear projection ->
    # AdaptiveAvgPool3d(1) (identity here: features already pooled to 1x1x1) -> view.
    # Tiny (N, Cs+Cf) matmul — left to XLA on purpose (fusing it into the kernel saved
    # microseconds but cost a full extra HBM pass for the pathway concat).
    feat = jnp.concatenate([pooled_slow, pooled_fast], axis=-1)
    return feat @ params["w_proj"] + params["b_proj"]


# ---------------------------------------------------------------------------
# Deterministic parameter construction + pure-JAX reference + example run
# ---------------------------------------------------------------------------
def make_params(key, c_in=3, c_slow=32, c_fast=8, num_classes=32):
    ks = jax.random.split(key, 6)
    scale = 0.1
    return {
        "w_slow": scale * jax.random.normal(ks[0], (c_in, c_slow), jnp.float32),
        "b_slow": scale * jax.random.normal(ks[1], (1, c_slow), jnp.float32),
        "w_fast": scale * jax.random.normal(ks[2], (c_in, c_fast), jnp.float32),
        "b_fast": scale * jax.random.normal(ks[3], (1, c_fast), jnp.float32),
        "w_proj": scale * jax.random.normal(ks[4], (c_slow + c_fast, num_classes), jnp.float32),
        "b_proj": scale * jax.random.normal(ks[5], (1, num_classes), jnp.float32),
    }


def _reference_forward(x_slow, x_fast, params):
    """Pure-JAX f32 reference for a correctness check."""
    def stem_pool(x, w, b):
        n, c, t, h, ww = x.shape
        rows = jnp.transpose(x, (0, 2, 3, 4, 1)).reshape(n, t * h * ww, c)
        y = jnp.maximum(rows @ w + b, 0.0)
        return jnp.mean(y, axis=1)

    feat = jnp.concatenate(
        [stem_pool(x_slow, params["w_slow"], params["b_slow"]),
         stem_pool(x_fast, params["w_fast"], params["b_fast"])], axis=-1)
    return feat @ params["w_proj"] + params["b_proj"]


if __name__ == "__main__":
    key = jax.random.PRNGKey(0)
    k_param, k_slow, k_fast = jax.random.split(key, 3)

    N, C_in, H, W = 2, 3, 16, 16
    T_slow, T_fast = 4, 16          # SlowFast alpha = 4 (fast pathway has more frames)

    params = make_params(k_param, c_in=C_in, c_slow=32, c_fast=8, num_classes=32)
    x_slow = jax.random.normal(k_slow, (N, C_in, T_slow, H, W), jnp.float32)
    x_fast = jax.random.normal(k_fast, (N, C_in, T_fast, H, W), jnp.float32)

    out = my_slowfast_forward(x_slow, x_fast, params)
    out = jax.block_until_ready(out)

    assert out.shape == (N, 32) and out.dtype == jnp.float32

    ref = _reference_forward(x_slow, x_fast, params)
    max_err = float(jnp.max(jnp.abs(out - ref)))
    assert max_err < 1e-3, f"mismatch vs reference: {max_err}"

    print("KERNEL_OK")
</pallas_src>

<mosaic_0001>
module attributes {stable_mosaic.version = 11 : i64} {
  func.func @kernel(%arg0: i32, %arg1: i32, %arg2: memref<1x3x1024xf32, #tpu.memory_space<vmem>>, %arg3: memref<32x3xf32, #tpu.memory_space<vmem>>, %arg4: memref<32x1xf32, #tpu.memory_space<vmem>>, %arg5: memref<1x32x1xf32, #tpu.memory_space<vmem>>) attributes {dimension_semantics = [#tpu.dimension_semantics<parallel>, #tpu.dimension_semantics<arbitrary>], iteration_bounds = array<i64: 2, 1>, scalar_prefetch = 0 : i64, scratch_operands = 0 : i64, tpu.core_type = #tpu.core_type<tc>, window_params = [{transform_indices = @transform_0, window_bounds = array<i64: 1, 3, 1024>}, {pipeline_mode = #tpu.pipeline_mode<synchronous>, transform_indices = @transform_1, window_bounds = array<i64: 32, 3>}, {pipeline_mode = #tpu.pipeline_mode<synchronous>, transform_indices = @transform_2, window_bounds = array<i64: 32, 1>}, {transform_indices = @transform_3, window_bounds = array<i64: 1, 32, 1>}]} {
    %c0_i32 = arith.constant 0 : i32
    %0 = arith.cmpi eq, %arg1, %c0_i32 : i32
    %1 = arith.extui %0 : i1 to i32
    %c0_i32_0 = arith.constant 0 : i32
    %2 = arith.cmpi ne, %1, %c0_i32_0 : i32
    scf.if %2 {
      %cst_15 = arith.constant 0.000000e+00 : f32
      %20 = vector.broadcast %cst_15 : f32 to vector<1x32x1xf32>
      %c0_16 = arith.constant 0 : index
      %c0_17 = arith.constant 0 : index
      %c0_18 = arith.constant 0 : index
      %21 = vector.load %arg5[%c0_16, %c0_17, %c0_18] : memref<1x32x1xf32, #tpu.memory_space<vmem>>, vector<1x32x1xf32>
      tpu.vector_store %arg5[%c0_16, %c0_17, %c0_18], %20 {strides = array<i32>} : memref<1x32x1xf32, #tpu.memory_space<vmem>>, vector<1x32x1xf32>,
    } else {
    }
    %c0 = arith.constant 0 : index
    %c0_1 = arith.constant 0 : index
    %c0_2 = arith.constant 0 : index
    %3 = vector.load %arg2[%c0, %c0_1, %c0_2] : memref<1x3x1024xf32, #tpu.memory_space<vmem>>, vector<1x3x1024xf32>
    %4 = vector.shape_cast %3 : vector<1x3x1024xf32> to vector<3x1024xf32>
    %c0_3 = arith.constant 0 : index
    %c0_4 = arith.constant 0 : index
    %5 = vector.load %arg3[%c0_3, %c0_4] : memref<32x3xf32, #tpu.memory_space<vmem>>, vector<32x3xf32>
    %cst = arith.constant dense<0.000000e+00> : vector<32x1024xf32>
    %6 = tpu.matmul %5, %4, %cst {dimension_numbers = #tpu.dot_dimension_numbers<[1], [0], [0], [1], [0, 0, 1, 1], [], []>} : vector<32x3xf32>, vector<3x1024xf32>, vector<32x1024xf32> -> vector<32x1024xf32>
    %c0_5 = arith.constant 0 : index
    %c0_6 = arith.constant 0 : index
    %7 = vector.load %arg4[%c0_5, %c0_6] : memref<32x1xf32, #tpu.memory_space<vmem>>, vector<32x1xf32>
    %8 = vector.broadcast %7 : vector<32x1xf32> to vector<32x1024xf32>
    %9 = arith.addf %6, %8 : vector<32x1024xf32>
    %cst_7 = arith.constant 0.000000e+00 : f32
    %10 = vector.broadcast %cst_7 : f32 to vector<32x1024xf32>
    %11 = arith.maximumf %9, %10 : vector<32x1024xf32>
    %c0_8 = arith.constant 0 : index
    %c0_9 = arith.constant 0 : index
    %c0_10 = arith.constant 0 : index
    %12 = vector.load %arg5[%c0_8, %c0_9, %c0_10] : memref<1x32x1xf32, #tpu.memory_space<vmem>>, vector<1x32x1xf32>
    %13 = vector.shape_cast %12 : vector<1x32x1xf32> to vector<32x1xf32>
    %cst_11 = arith.constant dense<0.000000e+00> : vector<32xf32>
    %14 = vector.multi_reduction <add>, %11, %cst_11 [1] : vector<32x1024xf32> to vector<32xf32>
    %15 = vector.shape_cast %14 : vector<32xf32> to vector<32x1xf32>
    %16 = arith.addf %13, %15 : vector<32x1xf32>
    %c0_12 = arith.constant 0 : index
    %c0_13 = arith.constant 0 : index
    %c0_14 = arith.constant 0 : index
    %17 = vector.load %arg5[%c0_12, %c0_13, %c0_14] : memref<1x32x1xf32, #tpu.memory_space<vmem>>, vector<1x32x1xf32>
    %18 = vector.shape_cast %17 : vector<1x32x1xf32> to vector<32x1xf32>
    %19 = vector.shape_cast %16 : vector<32x1xf32> to vector<1x32x1xf32>
    tpu.vector_store %arg5[%c0_12, %c0_13, %c0_14], %19 {strides = array<i32>} : memref<1x32x1xf32, #tpu.memory_space<vmem>>, vector<1x32x1xf32>,
    return
  }
  func.func @transform_0(%arg0: i32, %arg1: i32) -> (i32, i32, i32) {
    %c0_i32 = arith.constant 0 : i32
    %c0_i32_0 = arith.constant 0 : i32
    return %arg0, %c0_i32, %arg1 : i32, i32, i32
  }
  func.func @transform_1(%arg0: i32, %arg1: i32) -> (i32, i32) {
    %c0_i32 = arith.constant 0 : i32
    %c0_i32_0 = arith.constant 0 : i32
    %c0_i32_1 = arith.constant 0 : i32
    return %c0_i32, %c0_i32_0 : i32, i32
  }
  func.func @transform_2(%arg0: i32, %arg1: i32) -> (i32, i32) {
    %c0_i32 = arith.constant 0 : i32
    %c0_i32_0 = arith.constant 0 : i32
    %c0_i32_1 = arith.constant 0 : i32
    return %c0_i32, %c0_i32_0 : i32, i32
  }
  func.func @transform_3(%arg0: i32, %arg1: i32) -> (i32, i32, i32) {
    %c0_i32 = arith.constant 0 : i32
    %c0_i32_0 = arith.constant 0 : i32
    %c0_i32_1 = arith.constant 0 : i32
    return %arg0, %c0_i32, %c0_i32_0 : i32, i32, i32
  }
}

</mosaic_0001>

<bundles_post_ra>
// kernel: tpu_custom_call.1
= control target key start
LH: loop header
LB: loop body
LE: loop exit
PB: predicated region body
PF: predicated region fallthrough
CT: control target
= control target key end

     0   :  { %s899_s12 = smov 0   ;;  %s901_s13 = smov 0   ;;  %s1069_s0 = inlined_call_operand.vmem [shape: f32[2,3,1024], index: 0, kind: input, shape index: {}]   ;;  %s1070_s1 = inlined_call_operand.vmem [shape: f32[32,3], index: 1, kind: input, shape index: {}]   ;;  %s1071_s2 = inlined_call_operand.vmem [shape: f32[32,1], index: 2, kind: input, shape index: {}]   ;;  %s1072_s3 = inlined_call_operand.vmem [shape: f32[2,32,1], index: 3, kind: output, shape index: {}]  }
   0x1   :  { %s903_s14 = smov 0  }
   0x2 LB: > { %s25_s15 = sadd.s32 1, %s871_s13  ;;  %p788_p0 = scmp.ge.s32.totalorder %s875_s14, 1  ;;  %s875_s14 = sphi %s903_s14, %s13_s14   ;;  %s871_s13 = sphi %s901_s13, %s1074_s13   ;;  %s867_s12 = sphi %s899_s12, %s1073_s12  }
   0x3   : > { %p27_p1 = scmp.ge.s32.totalorder %s25_s15, 2  ;;  %p156_p2 = scmp.lt.s32.totalorder %s875_s14, 3 }
   0x5   : > { %s1076_s15 = smov (%p27_p1, %s25_s15), 0  ;;  %p157_p3 = pnand %p788_p0, %p156_p2 }
   0x6   : > { %p185_p4 = scmp.lt.s32.totalorder (!%p157_p3), %s867_s12, 1  ;;  %v877_v0 = vmov (!%p157_p3), 0.0   ;;  %v216_v1 = vld [vmem:[%s1071_s2] sm:$0xff] (!%p157_p3)  ;;  %v878_v2 = vmov (!%p157_p3), 0   ;;  %v218_v3 = vld [vmem:[%s1071_s2 + $0x10] sm:$0xff] (!%p157_p3)  ;;  %v217_v4 = vld [vmem:[%s1071_s2 + $0x8] sm:$0xff] (!%p157_p3) }
   0x7   : > { %160 = sbr.rel (%p157_p3) target bundleno = 419 (0x1a3), region = 32  ;;  %342 = vmatprep.mubr.f32.mxu0 (!%p157_p3), %v877_v0  ;;  %431 = vmatprep.mubr.f32.mxu1 (!%p157_p3), %v877_v0  ;;  %v219_v5 = vld [vmem:[%s1071_s2 + $0x18] sm:$0xff] (!%p157_p3)  ;;  %vm261_vm0 = vcmask (!%p157_p3), 1042432   ;;  %v212_v12 = vld [vmem:[%s1070_s1] sm:$0xff] (!%p157_p3)  ;;  %vm248_vm1 = vcmask (!%p157_p3), 23552   ;;  %v213_v15 = vld [vmem:[%s1070_s1 + $0x8] sm:$0xff] (!%p157_p3) }
   0x8   : > { %847 = vset.pattern.permute.xlu0 (!%p157_p3), %v878_v2  ;;  %848 = vset.pattern.permute.xlu1 (!%p157_p3), %v878_v2  ;;  %v214_v16 = vld [vmem:[%s1070_s1 + $0x10] sm:$0xff] (!%p157_p3)  ;;  %v215_v17 = vld [vmem:[%s1070_s1 + $0x18] sm:$0xff] (!%p157_p3)  ;;  %vm203_vm2 = vcmask (!%p157_p3), 7168  }
   0x9   : > { %222 = vperm.xlu0 (!%p157_p3), %847, %v216_v1   ;;  %232 = vperm.xlu1 (!%p157_p3), %848, %v218_v3  }
   0xd   : > { %227 = vperm.xlu0 (!%p157_p3), %847, %v217_v4   ;;  %237 = vperm.xlu1 (!%p157_p3), %848, %v219_v5  }
   0xe   : > { %s1078_s12 = smov (!%p185_p4, %s867_s12), 1 }
   0xf   : > { %s819_s20 = sshll.u32 %s1078_s12, 5 }
  0x10   : > { %s192_s27 = scalar_lea.vmem %s1069_s0, %s819_s20  ;;  %s994_s11 = scalar_lea.vmem %s1072_s3, %s819_s20 }
  0x11   : > { %v208_v6 = vld [vmem:[%s192_s27] sm:$0x77]  ;;  %v209_v7 = vld [vmem:[%s192_s27 + $0x8] sm:$0x77]  ;;  %v210_v8 = vld [vmem:[%s192_s27 + $0x10] sm:$0x77] }
  0x12   : > { %v244_v9 = vcombine.high %v208_v6, %v208_v6  ;;  %v245_v10 = vcombine.high %v209_v7, %v209_v7  ;;  %v211_v11 = vld [vmem:[%s192_s27 + $0x18] sm:$0x77]  ;;  %v246_v13 = vcombine.high %v210_v8, %v210_v8  ;;  %204 = vst.msk [vmem:[%s994_s11] sm:$0xff] %vm203_vm2, %v877_v0  ;;  %205 = vst.msk [vmem:[%s994_s11 + $0x8] sm:$0xff] %vm203_vm2, %v877_v0 }
  0x13   : > { %v247_v14 = vcombine.high %v211_v11, %v211_v11  ;;  %206 = vst.msk [vmem:[%s994_s11 + $0x10] sm:$0xff] %vm203_vm2, %v877_v0  ;;  %207 = vst.msk [vmem:[%s994_s11 + $0x18] sm:$0xff] %vm203_vm2, %v877_v0 }
  0x14   : > { %793 = vmatprep.subr.msk.mxu0 %vm261_vm0, %v244_v9  ;;  %799 = vmatprep.subr.msk.mxu1 %vm261_vm0, %v245_v10 }
  0x15   : > { %794 = vmatpush1.msk.msra.mxu0 %vm261_vm0, %v208_v6  ;;  %800 = vmatpush1.msk.msra.mxu1 %vm261_vm0, %v209_v7 }
  0x16   : > { %795 = vmatmul.mubr.msk.f32.vlgmr.msra.gmra.mrb[0].mxu0 %vm248_vm1, %v212_v12  ;;  %801 = vmatmul.mubr.msk.f32.vlgmr.msra.gmra.mrb[0].mxu1 %vm248_vm1, %v212_v12 }
  0x17   : > { %805 = vmatprep.subr.msk.mxu0 %vm261_vm0, %v246_v13  ;;  %348 = vmatprep.mubr.f32.mxu0 %v877_v0 }
  0x18   : > { %806 = vmatpush1.msk.msra.mxu0 %vm261_vm0, %v210_v8  ;;  %437 = vmatprep.mubr.f32.mxu1 %v877_v0 }
  0x19   : > { %811 = vmatprep.subr.msk.mxu1 %vm261_vm0, %v247_v14 }
  0x1a   : > { %796 = vmatmul.mubr.msk.f32.gmra.mrb[2].mxu0 %vm248_vm1, %v213_v15  ;;  %802 = vmatmul.mubr.msk.f32.gmra.mrb[2].mxu1 %vm248_vm1, %v213_v15 }
  0x1b   : > { %812 = vmatpush1.msk.msra.mxu1 %vm261_vm0, %v211_v11  ;;  %354 = vmatprep.mubr.f32.mxu0 %v877_v0 }
  0x1c   : > { %443 = vmatprep.mubr.f32.mxu1 %v877_v0 }
  0x1e   : > { %797 = vmatmul.mubr.msk.f32.gmra.mrb[4].mxu0 %vm248_vm1, %v214_v16  ;;  %803 = vmatmul.mubr.msk.f32.gmra.mrb[4].mxu1 %vm248_vm1, %v214_v16 }
  0x1f   : > { %360 = vmatprep.mubr.f32.mxu0 %v877_v0  ;;  %449 = vmatprep.mubr.f32.mxu1 %v877_v0 }
  0x22   : > { %798 = vmatmul.mubr.msk.f32.gmra.mrb[6].mxu0 %vm248_vm1, %v215_v17  ;;  %804 = vmatmul.mubr.msk.f32.gmra.mrb[6].mxu1 %vm248_vm1, %v215_v17 }
  0x23   : > { %520 = vmatprep.mubr.f32.mxu0 %v877_v0  ;;  %609 = vmatprep.mubr.f32.mxu1 %v877_v0 }
  0x26   : > { %807 = vmatmul.mubr.msk.f32.vlgmr.msra.gmra.mrb[8].mxu0 %vm248_vm1, %v212_v12  ;;  %813 = vmatmul.mubr.msk.f32.vlgmr.msra.gmra.mrb[8].mxu1 %vm248_vm1, %v212_v12 }
  0x27   : > { %526 = vmatprep.mubr.f32.mxu0 %v877_v0  ;;  %615 = vmatprep.mubr.f32.mxu1 %v877_v0 }
  0x2a   : > { %808 = vmatmul.mubr.msk.f32.gmra.mrb[10].mxu0 %vm248_vm1, %v213_v15  ;;  %814 = vmatmul.mubr.msk.f32.gmra.mrb[10].mxu1 %vm248_vm1, %v213_v15 }
  0x2b   : > { %532 = vmatprep.mubr.f32.mxu0 %v877_v0  ;;  %621 = vmatprep.mubr.f32.mxu1 %v877_v0 }
  0x2e   : > { %809 = vmatmul.mubr.msk.f32.gmra.mrb[12].mxu0 %vm248_vm1, %v214_v16  ;;  %815 = vmatmul.mubr.msk.f32.gmra.mrb[12].mxu1 %vm248_vm1, %v214_v16 }
  0x2f   : > { %538 = vmatprep.mubr.f32.mxu0 %v877_v0  ;;  %627 = vmatprep.mubr.f32.mxu1 %v877_v0 }
  0x32   : > { %810 = vmatmul.mubr.msk.f32.gmra.mrb[14].mxu0 %vm248_vm1, %v215_v17  ;;  %816 = vmatmul.mubr.msk.f32.gmra.mrb[14].mxu1 %vm248_vm1, %v215_v17 }
  0x88   : > { %v1008_v18 = vpop.permute.xlu0 %222  ;;  %v1016_v29 = vpop.permute.xlu1 %232 }
  0x8c   : > { %v1013_v26 = vpop.permute.xlu0 %227  ;;  %v1025_v56 = vpop.permute.xlu1 %237 }
  0xe9   : > { %v344_v19 = vpop.f32.mrb[0].mxu0  ;;  %v433_v20 = vpop.f32.mrb[0].mxu1 }
  0xea   : > { %v345_v21 = vadd.f32 %v344_v19, %v1008_v18  ;;  %v346_v22 = vpop.f32.mrb[1].mxu0  ;;  %v434_v23 = vadd.f32 %v433_v20, %v1008_v18  ;;  %v435_v24 = vpop.f32.mrb[1].mxu1 }
  0xeb   : > { %v347_v25 = vadd.f32 %v346_v22, %v1008_v18  ;;  %v436_v27 = vadd.f32 %v435_v24, %v1008_v18 }
  0xec   : > { %v634_v28 = vmax.f32 %v345_v21, 0.0  ;;  %v636_v31 = vmax.f32 %v434_v23, 0.0 }
  0xed   : > { %v635_v30 = vmax.f32 %v347_v25, 0.0  ;;  %v350_v32 = vpop.f32.mrb[2].mxu0  ;;  %v439_v33 = vpop.f32.mrb[2].mxu1  ;;  %v637_v40 = vmax.f32 %v436_v27, 0.0 }
  0xee   : > { %v351_v34 = vadd.f32 %v350_v32, %v1013_v26  ;;  %v352_v35 = vpop.f32.mrb[3].mxu0  ;;  %v440_v36 = vadd.f32 %v439_v33, %v1013_v26  ;;  %v441_v37 = vpop.f32.mrb[3].mxu1 }
  0xef   : > { %v670_v38 = vadd.f32 %v635_v30, %v634_v28  ;;  %v353_v39 = vadd.f32 %v352_v35, %v1013_v26  ;;  %v442_v41 = vadd.f32 %v441_v37, %v1013_v26 }
  0xf0   : > { %v642_v42 = vmax.f32 %v351_v34, 0.0  ;;  %v644_v45 = vmax.f32 %v440_v36, 0.0 }
  0xf1   : > { %v671_v43 = vadd.f32 %v670_v38, %v636_v31  ;;  %v643_v44 = vmax.f32 %v353_v39, 0.0  ;;  %v356_v46 = vpop.f32.mrb[4].mxu0  ;;  %v445_v47 = vpop.f32.mrb[4].mxu1  ;;  %v645_v50 = vmax.f32 %v442_v41, 0.0 }
  0xf2   : > { %v357_v48 = vadd.f32 %v356_v46, %v1016_v29  ;;  %v358_v49 = vpop.f32.mrb[5].mxu0  ;;  %v446_v51 = vadd.f32 %v445_v47, %v1016_v29  ;;  %v447_v52 = vpop.f32.mrb[5].mxu1 }
  0xf3   : > { %v679_v53 = vadd.f32 %v643_v44, %v642_v42  ;;  %v672_v54 = vadd.f32 %v671_v43, %v637_v40  ;;  %v359_v55 = vadd.f32 %v358_v49, %v1016_v29  ;;  %v448_v57 = vadd.f32 %v447_v52, %v1016_v29 }
  0xf4   : > { %v650_v58 = vmax.f32 %v357_v48, 0.0  ;;  %v652_v61 = vmax.f32 %v446_v51, 0.0 }
  0xf5   : > { %v680_v59 = vadd.f32 %v679_v53, %v644_v45  ;;  %v651_v60 = vmax.f32 %v359_v55, 0.0  ;;  %v362_v62 = vpop.f32.mrb[6].mxu0  ;;  %v451_v63 = vpop.f32.mrb[6].mxu1  ;;  %v653_v2 = vmax.f32 %v448_v57, 0.0 }
  0xf6   : > { %v363_v0 = vadd.f32 %v362_v62, %v1025_v56  ;;  %v364_v1 = vpop.f32.mrb[7].mxu0  ;;  %v452_v3 = vadd.f32 %v451_v63, %v1025_v56  ;;  %v453_v4 = vpop.f32.mrb[7].mxu1 }
  0xf7   : > { %v688_v5 = vadd.f32 %v651_v60, %v650_v58  ;;  %v681_v6 = vadd.f32 %v680_v59, %v645_v50  ;;  %v365_v7 = vadd.f32 %v364_v1, %v1025_v56  ;;  %v454_v8 = vadd.f32 %v453_v4, %v1025_v56 }
  0xf8   : > { %v658_v9 = vmax.f32 %v363_v0, 0.0  ;;  %v660_v12 = vmax.f32 %v452_v3, 0.0 }
  0xf9   : > { %v689_v10 = vadd.f32 %v688_v5, %v652_v61  ;;  %v659_v11 = vmax.f32 %v365_v7, 0.0  ;;  %v522_v13 = vpop.f32.mrb[8].mxu0  ;;  %v611_v14 = vpop.f32.mrb[8].mxu1  ;;  %v661_v21 = vmax.f32 %v454_v8, 0.0 }
  0xfa   : > { %v523_v15 = vadd.f32 %v522_v13, %v1008_v18  ;;  %v524_v16 = vpop.f32.mrb[9].mxu0  ;;  %v613_v17 = vpop.f32.mrb[9].mxu1  ;;  %v612_v24 = vadd.f32 %v611_v14, %v1008_v18 }
  0xfb   : > { %v697_v19 = vadd.f32 %v659_v11, %v658_v9  ;;  %v690_v20 = vadd.f32 %v689_v10, %v653_v2  ;;  %v525_v22 = vadd.f32 %v524_v16, %v1008_v18  ;;  %v614_v32 = vadd.f32 %v613_v17, %v1008_v18 }
  0xfc   : > { %v638_v23 = vmax.f32 %v523_v15, 0.0  ;;  %v640_v38 = vmax.f32 %v612_v24, 0.0 }
  0xfd   : > { %v698_v25 = vadd.f32 %v697_v19, %v660_v12  ;;  %v639_v27 = vmax.f32 %v525_v22, 0.0  ;;  %v528_v28 = vpop.f32.mrb[10].mxu0  ;;  %v617_v30 = vpop.f32.mrb[10].mxu1  ;;  %v641_v46 = vmax.f32 %v614_v32, 0.0 }
  0xfe   : > { %v673_v31 = vadd.f32 %v672_v54, %v638_v23  ;;  %v529_v33 = vadd.f32 %v528_v28, %v1013_v26  ;;  %v530_v34 = vpop.f32.mrb[11].mxu0  ;;  %v619_v35 = vpop.f32.mrb[11].mxu1  ;;  %v618_v41 = vadd.f32 %v617_v30, %v1013_v26  ;;  %v667_v23 = vld [vmem:[%s994_s11 + $0x8] sm:$0xff]  ;;  %v669_v30 = vld [vmem:[%s994_s11 + $0x18] sm:$0xff] }
  0xff   : > { %v699_v36 = vadd.f32 %v698_v25, %v661_v21  ;;  %v531_v37 = vadd.f32 %v530_v34, %v1013_v26  ;;  %v620_v43 = vadd.f32 %v619_v35, %v1013_v26  ;;  %v668_v25 = vld [vmem:[%s994_s11 + $0x10] sm:$0xff] }
 0x100   : > { %v674_v39 = vadd.f32 %v673_v31, %v639_v27  ;;  %v646_v40 = vmax.f32 %v529_v33, 0.0  ;;  %v648_v53 = vmax.f32 %v618_v41, 0.0 }
 0x101   : > { %v647_v42 = vmax.f32 %v531_v37, 0.0  ;;  %v534_v44 = vpop.f32.mrb[12].mxu0  ;;  %v623_v45 = vpop.f32.mrb[12].mxu1  ;;  %v649_v58 = vmax.f32 %v620_v43, 0.0 }
 0x102   : > { %v682_v47 = vadd.f32 %v681_v6, %v646_v40  ;;  %v535_v18 = vadd.f32 %v534_v44, %v1016_v29  ;;  %v536_v48 = vpop.f32.mrb[13].mxu0  ;;  %v625_v49 = vpop.f32.mrb[13].mxu1  ;;  %v675_v50 = vadd.f32 %v674_v39, %v640_v38  ;;  %v624_v51 = vadd.f32 %v623_v45, %v1016_v29 }
 0x103   : > { %v537_v52 = vadd.f32 %v536_v48, %v1016_v29  ;;  %v626_v62 = vadd.f32 %v625_v49, %v1016_v29 }
 0x104   : > { %v683_v54 = vadd.f32 %v682_v47, %v647_v42  ;;  %v654_v55 = vmax.f32 %v535_v18, 0.0  ;;  %v676_v57 = vadd.f32 %v675_v50, %v641_v46  ;;  %v656_v3 = vmax.f32 %v624_v51, 0.0 }
 0x105   : > { %v655_v59 = vmax.f32 %v537_v52, 0.0  ;;  %v540_v26 = vpop.f32.mrb[14].mxu0  ;;  %v629_v60 = vpop.f32.mrb[14].mxu1  ;;  %v657_v10 = vmax.f32 %v626_v62, 0.0 }
 0x106   : > { %v691_v61 = vadd.f32 %v690_v20, %v654_v55  ;;  %v541_v63 = vadd.f32 %v540_v26, %v1025_v56  ;;  %v542_v0 = vpop.f32.mrb[15].mxu0  ;;  %v631_v1 = vpop.f32.mrb[15].mxu1  ;;  %677 = vadd.xlane.f32.xlu0 %v676_v57  ;;  %v684_v2 = vadd.f32 %v683_v54, %v648_v53  ;;  %v630_v7 = vadd.f32 %v629_v60, %v1025_v56  ;;  %v666_v20 = vld [vmem:[%s994_s11] sm:$0xff] }
 0x107   : > { %v543_v4 = vadd.f32 %v542_v0, %v1025_v56  ;;  %v632_v29 = vadd.f32 %v631_v1, %v1025_v56 }
 0x108   : > { %v692_v5 = vadd.f32 %v691_v61, %v655_v59  ;;  %v662_v6 = vmax.f32 %v541_v63, 0.0  ;;  %v685_v8 = vadd.f32 %v684_v2, %v649_v58  ;;  %v664_v13 = vmax.f32 %v630_v7, 0.0 }
 0x109   : > { %v663_v9 = vmax.f32 %v543_v4, 0.0  ;;  %v665_v16 = vmax.f32 %v632_v29, 0.0 }
 0x10a   : > { %v700_v11 = vadd.f32 %v699_v36, %v662_v6  ;;  %686 = vadd.xlane.f32.xlu1 %v685_v8  ;;  %v693_v12 = vadd.f32 %v692_v5, %v656_v3 }
 0x10c   : > { %v701_v14 = vadd.f32 %v700_v11, %v663_v9  ;;  %v694_v15 = vadd.f32 %v693_v12, %v657_v10 }
 0x10e   : > { %695 = vadd.xlane.f32.xlu0 %v694_v15  ;;  %v702_v17 = vadd.f32 %v701_v14, %v664_v13 }
 0x110   : > { %v703_v19 = vadd.f32 %v702_v17, %v665_v16 }
 0x112   : > { %704 = vadd.xlane.f32.xlu0 %v703_v19 }
 0x193   : > { %v678_v21 = vpop.xlane.xlu0 %677 }
 0x194   : > { %v706_v22 = vadd.f32 %v678_v21, %v666_v20 }
 0x196   : > { %711 = vst.msk [vmem:[%s994_s11] sm:$0xff] %vm203_vm2, %v706_v22 }
 0x197   : > { %v687_v56 = vpop.xlane.xlu1 %686 }
 0x198   : > { %v707_v24 = vadd.f32 %v687_v56, %v667_v23 }
 0x19a   : > { %712 = vst.msk [vmem:[%s994_s11 + $0x8] sm:$0xff] %vm203_vm2, %v707_v24 }
 0x19b   : > { %v696_v27 = vpop.xlane.xlu0 %695 }
 0x19c   : > { %v708_v28 = vadd.f32 %v696_v27, %v668_v25 }
 0x19e   : > { %713 = vst.msk [vmem:[%s994_s11 + $0x10] sm:$0xff] %vm203_vm2, %v708_v28 }
 0x19f   : > { %v705_v31 = vpop.xlane.xlu0 %704 }
 0x1a0   : > { %v709_v32 = vadd.f32 %v705_v31, %v669_v30 }
 0x1a2   : > { %714 = vst.msk [vmem:[%s994_s11 + $0x18] sm:$0xff] %vm203_vm2, %v709_v32 }
 0x1a3 PF: > { %s13_s14 = sadd.s32 1, %s875_s14   ;;  %s1073_s12 = smov %s871_s13 }
 0x1a4   : > { %p10_p5 = scmp.ge.s32.totalorder %s13_s14, 4   ;;  %s1074_s13 = smov %s1076_s15 }
 0x1a6   :  { %12 = sbr.rel (!%p10_p5) target bundleno = 2 (0x2), region = 66 }

</bundles_post_ra>
